<compile_context>
chip_gen: v7x
topology: tpu7x:2x2x1
jax: 0.10.0
libtpu: 0.0.40
codegen_flags: <defaults>
</compile_context>

<pallas_src>
import jax
import jax.numpy as jnp
from jax.experimental import pallas as pl
from jax.experimental.pallas import tpu as pltpu


def mean_pool_kernel(h_ref, m_ref, o_ref, acc_ref, msum_ref):
    # h_ref:    (b_blk, s_blk, h_blk)  hidden-state tile (native dtype)
    # m_ref:    (b_blk, s_blk)         attention-mask tile (0/1, any int/float dtype)
    # o_ref:    (b_blk, h_blk)         f32 mean embeddings
    # acc_ref:  (b_blk, h_blk) f32     running masked sum over S
    # msum_ref: (b_blk, 1)     f32     running mask sum over S
    s = pl.program_id(2)

    @pl.when(s == 0)
    def _init():
        acc_ref[...] = jnp.zeros_like(acc_ref)
        msum_ref[...] = jnp.zeros_like(msum_ref)

    h = h_ref[...]                                  # no eager f32 upcast of the tile
    m = m_ref[...]                                  # (b_blk, s_blk)
    mh = m.astype(h.dtype)[:, :, None]              # 0/1 mask -> exact product, lane-broadcast
    acc_ref[...] += jnp.sum(h * mh, axis=1, dtype=jnp.float32)            # (b_blk, h_blk)
    msum_ref[...] += jnp.sum(m.astype(jnp.float32), axis=1, keepdims=True)  # (b_blk, 1)

    @pl.when(s == pl.num_programs(2) - 1)
    def _finalize():
        denom = jnp.maximum(msum_ref[...], 1e-9)    # torch.clamp(min=1e-9)
        o_ref[...] = (acc_ref[...] / denom).astype(o_ref.dtype)


def _pick_block(dim, preferred, align):
    """Full dim if small; else the largest multiple of `align` <= `preferred`
    that divides `dim`; else fall back to the full dim (still a legal block)."""
    if dim <= preferred:
        return dim
    blk = (preferred // align) * align
    while blk >= align:
        if dim % blk == 0:
            return blk
        blk -= align
    return dim


def _vmem_capacity_bytes():
    try:
        return int(pltpu.get_tpu_info().vmem_capacity_bytes)
    except Exception:
        return 64 * 1024 * 1024  # conservative (v7x per-TC) if the query is unavailable


def _ensure_two_parallel_steps(b_blk, h_blk, B, H):
    """v7x has 2 TensorCores: make sure the parallel (B, H) grid has >= 2 steps
    when it can be done without breaking (8, 128) alignment."""
    if (B // b_blk) * (H // h_blk) >= 2:
        return b_blk, h_blk
    if h_blk % 256 == 0:          # keeps a 128-multiple lane-dense tile
        return b_blk, h_blk // 2
    if b_blk % 16 == 0:           # keeps an 8-multiple sublane-dense tile
        return b_blk // 2, h_blk
    return b_blk, h_blk           # shape too small to feed both TCs; correctness unaffected


def mean_pooling(last_hidden_state, attention_mask):
    B, S, H = last_hidden_state.shape
    assert attention_mask.shape == (B, S)

    # Generation-aware budgets.
    vmem_cap = _vmem_capacity_bytes()
    if vmem_cap >= 96 * 1024 * 1024:          # v5e / v6e (128 MiB VMEM per TC)
        target_block_bytes = 4 * 1024 * 1024
        vmem_limit = 48 * 1024 * 1024
    else:                                     # v7x (64 MiB VMEM per TC)
        target_block_bytes = 2 * 1024 * 1024
        vmem_limit = 28 * 1024 * 1024

    # H tile: lane-dense, multiple of 128 (or the full H when H is small).
    h_blk = _pick_block(H, 512, 128)

    # B tile: >= 8 rows when possible (sublane-dense output writes).
    b_blk = _pick_block(B, 8, 8)

    # S tile: stream the sequence so one hidden-state block stays within the
    # per-buffer budget (double-buffered pipeline then fits comfortably).
    itemsize = jnp.dtype(last_hidden_state.dtype).itemsize
    s_target = max(8, target_block_bytes // max(b_blk * h_blk * itemsize, 1))
    s_blk = _pick_block(S, s_target, 8)

    # If the whole sequence fits in one chunk, grow the batch tile toward the
    # budget instead (fewer grid steps, better per-step amortization).
    if s_blk == S:
        b_target = max(8, target_block_bytes // max(S * h_blk * itemsize, 1))
        b_blk = _pick_block(B, b_target, 8)

    # v7x: give both TensorCores work along a parallel axis when possible.
    b_blk, h_blk = _ensure_two_parallel_steps(b_blk, h_blk, B, H)

    grid = (B // b_blk, H // h_blk, S // s_blk)

    return pl.pallas_call(
        mean_pool_kernel,
        out_shape=jax.ShapeDtypeStruct((B, H), jnp.float32),
        grid_spec=pltpu.PrefetchScalarGridSpec(
            num_scalar_prefetch=0,
            grid=grid,
            in_specs=[
                # Hidden states: (b, s, h) tile.
                pl.BlockSpec((b_blk, s_blk, h_blk), lambda i, j, s: (i, s, j)),
                # Mask stays 2-D: no 128-lane padding of a size-1 minor dim.
                pl.BlockSpec((b_blk, s_blk), lambda i, j, s: (i, s)),
            ],
            # Output block constant along the S (reduction) axis -> accumulator.
            out_specs=pl.BlockSpec((b_blk, h_blk), lambda i, j, s: (i, j)),
            scratch_shapes=[
                pltpu.VMEM((b_blk, h_blk), jnp.float32),  # masked-sum accumulator
                pltpu.VMEM((b_blk, 1), jnp.float32),      # mask-sum accumulator
            ],
        ),
        compiler_params=pltpu.CompilerParams(
            dimension_semantics=("parallel", "parallel", "arbitrary"),
            vmem_limit_bytes=vmem_limit,
        ),
    )(last_hidden_state, attention_mask)


if __name__ == "__main__":
    key = jax.random.PRNGKey(0)
    k1, k2 = jax.random.split(key)
    B, S, H = 2, 8, 32
    last_hidden_state = jax.random.normal(k1, (B, S, H), dtype=jnp.float32)
    # Integer 0/1 attention mask (like HF tokenizer output); cast in-kernel.
    attention_mask = (jax.random.uniform(k2, (B, S)) > 0.3).astype(jnp.int32)

    out = mean_pooling(last_hidden_state, attention_mask)
    jax.block_until_ready(out)

    # Reference in plain JAX (mirrors the PyTorch forward exactly).
    m = attention_mask[..., None].astype(jnp.float32)
    ref = jnp.sum(last_hidden_state * m, axis=1) / jnp.maximum(jnp.sum(m, axis=1), 1e-9)
    assert out.shape == (B, H)
    assert jnp.allclose(out, ref, atol=1e-5, rtol=1e-5)
    print("KERNEL_OK")
</pallas_src>

<mosaic_0001>
module attributes {stable_mosaic.version = 11 : i64} {
  func.func @mean_pool_kernel(%arg0: i32, %arg1: i32, %arg2: i32, %arg3: memref<2x8x32xf32, #tpu.memory_space<vmem>>, %arg4: memref<2x8xi32, #tpu.memory_space<vmem>>, %arg5: memref<2x32xf32, #tpu.memory_space<vmem>>, %arg6: memref<2x32xf32, #tpu.memory_space<vmem>>, %arg7: memref<2x1xf32, #tpu.memory_space<vmem>>) attributes {dimension_semantics = [#tpu.dimension_semantics<parallel>, #tpu.dimension_semantics<parallel>, #tpu.dimension_semantics<arbitrary>], iteration_bounds = array<i64: 1, 1, 1>, scalar_prefetch = 0 : i64, scratch_operands = 2 : i64, tpu.core_type = #tpu.core_type<tc>, window_params = [{transform_indices = @transform_0, window_bounds = array<i64: 2, 8, 32>}, {transform_indices = @transform_1, window_bounds = array<i64: 2, 8>}, {transform_indices = @transform_2, window_bounds = array<i64: 2, 32>}]} {
    %c0_i32 = arith.constant 0 : i32
    %0 = arith.cmpi eq, %arg2, %c0_i32 : i32
    %1 = arith.extui %0 : i1 to i32
    %c0_i32_0 = arith.constant 0 : i32
    %2 = arith.cmpi ne, %1, %c0_i32_0 : i32
    scf.if %2 {
      %cst_16 = arith.constant 0.000000e+00 : f32
      %22 = vector.broadcast %cst_16 : f32 to vector<2x32xf32>
      %c0_17 = arith.constant 0 : index
      %c0_18 = arith.constant 0 : index
      %23 = vector.load %arg6[%c0_17, %c0_18] : memref<2x32xf32, #tpu.memory_space<vmem>>, vector<2x32xf32>
      tpu.vector_store %arg6[%c0_17, %c0_18], %22 {strides = array<i32>} : memref<2x32xf32, #tpu.memory_space<vmem>>, vector<2x32xf32>,
      %cst_19 = arith.constant 0.000000e+00 : f32
      %24 = vector.broadcast %cst_19 : f32 to vector<2x1xf32>
      %c0_20 = arith.constant 0 : index
      %c0_21 = arith.constant 0 : index
      %25 = vector.load %arg7[%c0_20, %c0_21] : memref<2x1xf32, #tpu.memory_space<vmem>>, vector<2x1xf32>
      tpu.vector_store %arg7[%c0_20, %c0_21], %24 {strides = array<i32>} : memref<2x1xf32, #tpu.memory_space<vmem>>, vector<2x1xf32>,
    } else {
    }
    %c0 = arith.constant 0 : index
    %c0_1 = arith.constant 0 : index
    %c0_2 = arith.constant 0 : index
    %3 = vector.load %arg3[%c0, %c0_1, %c0_2] : memref<2x8x32xf32, #tpu.memory_space<vmem>>, vector<2x8x32xf32>
    %c0_3 = arith.constant 0 : index
    %c0_4 = arith.constant 0 : index
    %4 = vector.load %arg4[%c0_3, %c0_4] : memref<2x8xi32, #tpu.memory_space<vmem>>, vector<2x8xi32>
    %5 = arith.sitofp %4 : vector<2x8xi32> to vector<2x8xf32>
    %6 = vector.shape_cast %5 : vector<2x8xf32> to vector<2x8x1xf32>
    %c0_5 = arith.constant 0 : index
    %c0_6 = arith.constant 0 : index
    %7 = vector.load %arg6[%c0_5, %c0_6] : memref<2x32xf32, #tpu.memory_space<vmem>>, vector<2x32xf32>
    %8 = vector.broadcast %6 : vector<2x8x1xf32> to vector<2x8x32xf32>
    %9 = arith.mulf %3, %8 : vector<2x8x32xf32>
    %cst = arith.constant dense<0.000000e+00> : vector<2x32xf32>
    %10 = vector.multi_reduction <add>, %9, %cst [1] : vector<2x8x32xf32> to vector<2x32xf32>
    %11 = arith.addf %7, %10 : vector<2x32xf32>
    %c0_7 = arith.constant 0 : index
    %c0_8 = arith.constant 0 : index
    %12 = vector.load %arg6[%c0_7, %c0_8] : memref<2x32xf32, #tpu.memory_space<vmem>>, vector<2x32xf32>
    tpu.vector_store %arg6[%c0_7, %c0_8], %11 {strides = array<i32>} : memref<2x32xf32, #tpu.memory_space<vmem>>, vector<2x32xf32>,
    %c0_9 = arith.constant 0 : index
    %c0_10 = arith.constant 0 : index
    %13 = vector.load %arg7[%c0_9, %c0_10] : memref<2x1xf32, #tpu.memory_space<vmem>>, vector<2x1xf32>
    %14 = arith.sitofp %4 : vector<2x8xi32> to vector<2x8xf32>
    %cst_11 = arith.constant dense<0.000000e+00> : vector<2xf32>
    %15 = vector.multi_reduction <add>, %14, %cst_11 [1] : vector<2x8xf32> to vector<2xf32>
    %16 = vector.shape_cast %15 : vector<2xf32> to vector<2x1xf32>
    %17 = arith.addf %13, %16 : vector<2x1xf32>
    %c0_12 = arith.constant 0 : index
    %c0_13 = arith.constant 0 : index
    %18 = vector.load %arg7[%c0_12, %c0_13] : memref<2x1xf32, #tpu.memory_space<vmem>>, vector<2x1xf32>
    tpu.vector_store %arg7[%c0_12, %c0_13], %17 {strides = array<i32>} : memref<2x1xf32, #tpu.memory_space<vmem>>, vector<2x1xf32>,
    %c0_i32_14 = arith.constant 0 : i32
    %19 = arith.cmpi eq, %arg2, %c0_i32_14 : i32
    %20 = arith.extui %19 : i1 to i32
    %c0_i32_15 = arith.constant 0 : i32
    %21 = arith.cmpi ne, %20, %c0_i32_15 : i32
    scf.if %21 {
      %c0_16 = arith.constant 0 : index
      %c0_17 = arith.constant 0 : index
      %22 = vector.load %arg7[%c0_16, %c0_17] : memref<2x1xf32, #tpu.memory_space<vmem>>, vector<2x1xf32>
      %cst_18 = arith.constant 9.99999971E-10 : f32
      %23 = vector.broadcast %cst_18 : f32 to vector<2x1xf32>
      %24 = arith.maximumf %22, %23 : vector<2x1xf32>
      %c0_19 = arith.constant 0 : index
      %c0_20 = arith.constant 0 : index
      %25 = vector.load %arg6[%c0_19, %c0_20] : memref<2x32xf32, #tpu.memory_space<vmem>>, vector<2x32xf32>
      %26 = vector.broadcast %24 : vector<2x1xf32> to vector<2x32xf32>
      %27 = arith.divf %25, %26 : vector<2x32xf32>
      %c0_21 = arith.constant 0 : index
      %c0_22 = arith.constant 0 : index
      %28 = vector.load %arg5[%c0_21, %c0_22] : memref<2x32xf32, #tpu.memory_space<vmem>>, vector<2x32xf32>
      tpu.vector_store %arg5[%c0_21, %c0_22], %27 {strides = array<i32>} : memref<2x32xf32, #tpu.memory_space<vmem>>, vector<2x32xf32>,
    } else {
    }
    return
  }
  func.func @transform_0(%arg0: i32, %arg1: i32, %arg2: i32) -> (i32, i32, i32) {
    %c0_i32 = arith.constant 0 : i32
    return %arg0, %arg2, %arg1 : i32, i32, i32
  }
  func.func @transform_1(%arg0: i32, %arg1: i32, %arg2: i32) -> (i32, i32) {
    %c0_i32 = arith.constant 0 : i32
    return %arg0, %arg2 : i32, i32
  }
  func.func @transform_2(%arg0: i32, %arg1: i32, %arg2: i32) -> (i32, i32) {
    %c0_i32 = arith.constant 0 : i32
    return %arg0, %arg1 : i32, i32
  }
}

</mosaic_0001>

<bundles_post_ra>
// kernel: tpu_custom_call.1
= control target key start
LH: loop header
LB: loop body
LE: loop exit
PB: predicated region body
PF: predicated region fallthrough
CT: control target
= control target key end

     0   :  { %7 = vsyncpa [#allocation5], 0  ;;  %s226_s0 = inlined_call_operand.hbm [shape: f32[2,8,32], index: 0, kind: input, shape index: {}]   ;;  %s227_s1 = inlined_call_operand.vmem [shape: s32[2,8], index: 1, kind: input, shape index: {}]   ;;  %s228_s2 = inlined_call_operand.hbm [shape: f32[2,32], index: 2, kind: output, shape index: {}]  }
   0x1   :  { %8 = vsyncpa [#allocation6], 0  ;;  %s173_s9 = smov [#allocation4]   ;;  %s125_s13 = scalar_lea.hbm %s226_s0, 256 }
   0x2   :  { %s14_s10 = sshll.u32 %s173_s9, 4  ;;  %p126_p0 = scmp.ne.s32.totalorder %s226_s0, %s125_s13  ;;  %s15_s10 = int_to_ptr.vmem [resolvable:$true] %s14_s10 }
   0x3   :  { %p129_p1 = scmp.lt.u32.totalorder %s125_s13, %s226_s0 }
   0x5   :  { %p131_p2 = pnand %p129_p1, %p126_p0 }
   0x7   :  { %134 = shalt.err (!%p131_p2)
}
   0x8   :  { %s135_s18 = scalar_lea.vmem %s15_s10, 256  ;;  %p140_p4 = scmp.lt.s32.totalorder %s15_s10, %s15_s10 }
   0x9   :  { %p136_p3 = scmp.ne.s32.totalorder %s15_s10, %s135_s18  ;;  %p141_p5 = scmp.lt.s32.totalorder %s135_s18, %s135_s18 }
   0xb   :  { %p142_p6 = por %p141_p5, %p140_p4 }
   0xd   :  { %p143_p7 = pnand %p142_p6, %p136_p3 }
   0xf   :  { %146 = shalt.err (!%p143_p7)
}
  0x10   :  { %s174_s19 = smov 128   ;;  %s175_s20 = smov 8  }
  0x11   :  { %20 = dma.hbm_to_vmem [thread:$0]  %s226_s0, 256, %s15_s10, [#allocation5], %s174_s19, %s174_s19, %s175_s20  }
  0x12   :  { %169 = dma.done.wait [#allocation5], 256  }
  0x13   :  { %170 = vsyncadd [#allocation5], 4294967040  ;;  %vm32_vm0 = vcmask 1024   ;;  %v176_v0 = vmov 0.0   ;;  %v36_v1 = vld [vmem:[%s227_s1] sm:$0x3]  ;;  %v38_v4 = vlaneseq }
  0x14   :  { %33 = vst.msk [vmem:[#allocation3] sm:$0x3] %vm32_vm0, %v176_v0  ;;  %vm79_vm1 = vcmask 58368   ;;  %v37_v2 = vcvt.s32.f32 %v36_v1  ;;  %v177_v9 = vmov 0   ;;  %v35_v11 = vld [vmem:[#allocation4 + $0x8] sm:$0xff]  ;;  %vm55_vm2 = vcmask 261120  }
  0x15   :  { %v39_v5 = vshrl.u32 %v38_v4, 7  ;;  %121 = vset.pattern.permute.xlu1 %v177_v9  ;;  %122 = vset.pattern.permute.xlu0 %v177_v9  ;;  %vm30_vm3 = vcmask 254976   ;;  %v34_v20 = vld [vmem:[#allocation4] sm:$0xff]  ;;  %vm72_vm4 = vcmask 1041409   ;;  %s178_s0 = smov [#allocation7]  }
  0x16   :  { %v80_v3 = vsel %vm79_vm1, %v37_v2, 0.0  ;;  %31 = vst.msk [vmem:[#allocation2] sm:$0x3] %vm30_vm3, %v176_v0  ;;  %s106_s1 = sshll.u32 %s178_s0, 4  ;;  %s107_s1 = int_to_ptr.vmem [resolvable:$true] %s106_s1 }
  0x17   :  { %81 = vadd.xlane.f32.xlu0 %v80_v3  ;;  %v47_v6 = vsub.s32 1, %v39_v5  ;;  %v40_v8 = vsub.s32 0, %v39_v5  ;;  %s147_s25 = scalar_lea.vmem %s107_s1, 32  ;;  %p152_p9 = scmp.lt.s32.totalorder %s107_s1, %s107_s1 }
  0x18   :  { %p148_p8 = scmp.ne.s32.totalorder %s107_s1, %s147_s25  ;;  %p153_p10 = scmp.lt.s32.totalorder %s147_s25, %s147_s25 }
  0x19   :  { %v48_v7 = vrot.slane %v37_v2, %v47_v6  ;;  %v41_v10 = vrot.slane %v37_v2, %v40_v8 }
  0x1a   :  { %p154_p11 = por %p153_p10, %p152_p9 }
  0x1b   :  { %50 = vbcast.lane.b32.xlu1 %v48_v7, 256  ;;  %v78_v16 = vld [vmem:[#allocation3] sm:$0x3] }
  0x1c   :  { %p155_p12 = pnand %p154_p11, %p148_p8 }
  0x1d   :  { %v52_v36 = vld [vmem:[#allocation2] sm:$0x3] }
  0x2d   :  { %43 = vbcast.lane.b32.xlu0 %v41_v10, 256 }
  0x8d   :  { %v51_v12 = vpop.permute.xlu1 %50 }
  0x8e   :  { %v54_v13 = vmul.f32 %v51_v12, %v35_v11 }
  0x90   :  { %v63_v14 = vsel %vm55_vm2, %v54_v13, 0.0 }
  0x91   :  { %v64_v15 = vrot.slane %v63_v14, 4 }
  0x93   :  { %v65_v18 = vadd.f32 %v64_v15, %v63_v14 }
  0x95   :  { %v66_v21 = vrot.slane %v65_v18, 2 }
  0x97   :  { %v67_v25 = vadd.f32 %v66_v21, %v65_v18 }
  0x99   :  { %v68_v30 = vrot.slane %v67_v25, 1 }
  0x9b   :  { %v69_v33 = vadd.f32 %v68_v30, %v67_v25 }
  0xa4   :  { %v82_v17 = vpop.xlane.xlu0 %81 }
  0xa5   :  { %v83_v19 = vadd.f32 %v82_v17, %v78_v16 }
  0xa7   :  { %85 = vst.msk [vmem:[#allocation3] sm:$0x3] %vm32_vm0, %v83_v19 }
  0xa8   :  { %v44_v22 = vpop.permute.xlu0 %43 }
  0xa9   :  { %v53_v23 = vmul.f32 %v44_v22, %v34_v20 }
  0xab   :  { %v56_v24 = vsel %vm55_vm2, %v53_v23, 0.0 }
  0xac   :  { %v57_v26 = vrot.slane %v56_v24, 4 }
  0xae   :  { %v89_v27 = vld [vmem:[#allocation3] sm:$0x3]  ;;  %v58_v28 = vadd.f32 %v57_v26, %v56_v24 }
  0xaf   :  { %v90_v29 = vmax.f32 %v89_v27, 1e-09 }
  0xb0   :  { %v59_v31 = vrot.slane %v58_v28, 2 }
  0xb1   :  { %94 = vperm.xlu1 %121, %v90_v29  }
  0xb2   :  { %v60_v32 = vadd.f32 %v59_v31, %v58_v28 }
  0xb4   :  { %v61_v34 = vrot.slane %v60_v32, 1 }
  0xb6   :  { %v62_v35 = vadd.f32 %v61_v34, %v60_v32 }
  0xb8   :  { %v73_v37 = vsel %vm72_vm4, %v69_v33, %v62_v35 }
  0xb9   :  { %v75_v38 = vadd.f32 %v73_v37, %v52_v36 }
  0xbb   :  { %77 = vst.msk [vmem:[#allocation2] sm:$0x3] %vm30_vm3, %v75_v38 }
  0xc2   :  { %v91_v41 = vld [vmem:[#allocation2] sm:$0x3] }
 0x130   :  { %v95_v39 = vpop.permute.xlu1 %94 }
 0x131   :  { %123 = vrcp.f32 %v95_v39 }
 0x13b   :  { %v124_v40 = vpop.eup %123 }
 0x13c   :  { %v98_v42 = vmul.f32 %v124_v40, %v91_v41 }
 0x13e   :  { %99 = vst.msk [vmem:[#allocation7] sm:$0x3] %vm30_vm3, %v98_v42 }
 0x13f   :  { %158 = shalt.err (!%p155_p12)
}
 0x140   :  { %s159_s28 = scalar_lea.hbm %s228_s2, 32 }
 0x141   :  { %p160_p13 = scmp.ne.s32.totalorder %s228_s2, %s159_s28  ;;  %p163_p0 = scmp.lt.u32.totalorder %s159_s28, %s228_s2 }
 0x143   :  { %p165_p1 = pnand %p163_p0, %p160_p13 }
 0x145   :  { %168 = shalt.err (!%p165_p1)
}
 0x146   :  { %109 = dma.vmem_to_hbm [thread:$0]  %s107_s1, 32, %s228_s2, [#allocation6]  }
 0x147   :  { %171 = dma.done.wait [#allocation6], 32  }
 0x148   :  { %172 = vsyncadd [#allocation6], 4294967264 }
 0x149   :  { %113 = vsyncpa [#allocation5], 1 }
 0x14a   :  { %114 = vsyncpa [#allocation6], 1 }

</bundles_post_ra>
